<compile_context>
chip_gen: v6e
topology: v6e:2x2x1
jax: 0.10.0
libtpu: 0.0.40
codegen_flags: <defaults>
</compile_context>

<pallas_src>
import math
import numpy as np
import jax
import jax.numpy as jnp
from jax.experimental import pallas as pl
from jax.experimental.pallas import tpu as pltpu


def _round_up(v, m):
    return ((v + m - 1) // m) * m


def _tspe_kernel(x_ref, pe_ref, wt_ref, b_ref, gamma_ref, beta_ref, o_ref):
    # x_ref:   (TM, D)  row tile of the flattened (B*S_pad, D) input
    # pe_ref:  (TM, D)  matching positional-encoding rows (f32)
    # wt_ref:  (D, D)   W.T of the Linear layer (f32 or bf16)
    # b_ref / gamma_ref / beta_ref: (1, D) f32
    h = x_ref[...].astype(jnp.float32) + pe_ref[...]          # add positional enc.

    # Linear: h @ W.T + b  (MXU matmul, f32 accumulation)
    h = jnp.dot(h.astype(wt_ref.dtype), wt_ref[...],
                preferred_element_type=jnp.float32) + b_ref[...]

    # LayerNorm over last dim (eps = 1e-5, PyTorch default)
    mu = jnp.mean(h, axis=-1, keepdims=True)
    var = jnp.mean(jnp.square(h - mu), axis=-1, keepdims=True)
    hn = (h - mu) * jax.lax.rsqrt(var + 1e-5)
    hn = hn * gamma_ref[...] + beta_ref[...]

    # Exact GELU (erf-based), same as torch.nn.GELU default
    out = 0.5 * hn * (1.0 + jax.lax.erf(hn * (1.0 / math.sqrt(2.0))))

    o_ref[...] = out.astype(o_ref.dtype)


def time_series_positional_encoding(x, pe, w, b, gamma, beta, *,
                                    tile_rows=256, matmul_dtype=None):
    """x: (B, S, D); pe: (max_len, D); w: (D, D) PyTorch Linear weight (out, in).

    tile_rows:    max rows per grid step (multiple of 8; 256 suits v6e/v7x MXU,
                  still 128-aligned for v5e when S is large).
    matmul_dtype: dtype for the MXU operands (None -> f32, exact semantics;
                  jnp.bfloat16 -> ~2x MXU throughput, f32 accumulation).
    """
    B, S, D = x.shape
    out_dtype = x.dtype
    if matmul_dtype is None:
        matmul_dtype = jnp.float32

    # Row-tile size: multiple of 8 sublanes, capped at tile_rows.
    tm = min(tile_rows, _round_up(S, 8))
    tm = _round_up(tm, 8)
    s_pad = _round_up(S, tm)
    n_s_tiles = s_pad // tm
    n_tiles = B * n_s_tiles

    # Pad S so every row tile lies inside one batch element, then flatten.
    pe_s = pe[:S, :].astype(jnp.float32)
    if s_pad != S:
        x_p = jnp.pad(x, ((0, 0), (0, s_pad - S), (0, 0)))
        pe_s = jnp.pad(pe_s, ((0, s_pad - S), (0, 0)))
    else:
        x_p = x
    x_flat = x_p.reshape(B * s_pad, D)

    # Hoisted (one-time) param casts; kernel computes h @ W.T.
    wt = w.T.astype(matmul_dtype)
    b2 = b.reshape(1, D).astype(jnp.float32)
    g2 = gamma.reshape(1, D).astype(jnp.float32)
    be2 = beta.reshape(1, D).astype(jnp.float32)

    grid_spec = pltpu.PrefetchScalarGridSpec(
        num_scalar_prefetch=0,
        grid=(n_tiles,),
        in_specs=[
            pl.BlockSpec((tm, D), lambda i: (i, 0)),                # x rows
            pl.BlockSpec((tm, D), lambda i: (i % n_s_tiles, 0)),    # pe rows
            pl.BlockSpec((D, D), lambda i: (0, 0)),                 # W.T (invariant)
            pl.BlockSpec((1, D), lambda i: (0, 0)),                 # bias
            pl.BlockSpec((1, D), lambda i: (0, 0)),                 # gamma
            pl.BlockSpec((1, D), lambda i: (0, 0)),                 # beta
        ],
        out_specs=pl.BlockSpec((tm, D), lambda i: (i, 0)),
    )

    out_flat = pl.pallas_call(
        _tspe_kernel,
        out_shape=jax.ShapeDtypeStruct((B * s_pad, D), out_dtype),
        grid_spec=grid_spec,
        compiler_params=pltpu.CompilerParams(
            dimension_semantics=("parallel",),       # row tiles independent -> megacore
            vmem_limit_bytes=64 * 1024 * 1024,       # raise scoped VMEM above 16/32 MiB default
        ),
    )(x_flat, pe_s, wt, b2, g2, be2)

    out = out_flat.reshape(B, s_pad, D)
    if s_pad != S:
        out = out[:, :S, :]
    return out


def build_sinusoidal_pe(max_len, d_model):
    """Same construction as the PyTorch __init__ (initial value of the learnable pe)."""
    position = np.arange(0, max_len, dtype=np.float32)[:, None]            # (L, 1)
    div_term = np.exp(np.arange(0, d_model, 2, dtype=np.float32)
                      * (-np.log(10000.0) / d_model))                      # (D/2,)
    pe = np.zeros((max_len, d_model), dtype=np.float32)
    pe[:, 0::2] = np.sin(position * div_term)
    pe[:, 1::2] = np.cos(position * div_term)
    return jnp.asarray(pe)


def reference_jax(x, pe, w, b, gamma, beta):
    S = x.shape[1]
    h = x + pe[:S, :][None, :, :]
    h = jnp.einsum('bsd,ed->bse', h, w) + b
    mu = jnp.mean(h, axis=-1, keepdims=True)
    var = jnp.mean((h - mu) ** 2, axis=-1, keepdims=True)
    hn = (h - mu) / jnp.sqrt(var + 1e-5) * gamma + beta
    return 0.5 * hn * (1.0 + jax.lax.erf(hn / jnp.sqrt(2.0)))


if __name__ == "__main__":
    B, S, D = 2, 8, 32
    max_len = 64  # small max_len for the synthetic example (module default 5000)

    key = jax.random.PRNGKey(0)
    kx, kw, kb = jax.random.split(key, 3)

    x = jax.random.normal(kx, (B, S, D), dtype=jnp.float32)

    # Deterministic synthetic parameters (shapes follow the module __init__).
    pe = build_sinusoidal_pe(max_len, D)                        # learnable pe init
    bound = 1.0 / math.sqrt(D)
    w = jax.random.uniform(kw, (D, D), minval=-bound, maxval=bound,
                           dtype=jnp.float32)                   # nn.Linear weight (out, in)
    b = jax.random.uniform(kb, (D,), minval=-bound, maxval=bound,
                           dtype=jnp.float32)                   # nn.Linear bias
    gamma = jnp.ones((D,), dtype=jnp.float32)                   # LayerNorm weight init
    beta = jnp.zeros((D,), dtype=jnp.float32)                   # LayerNorm bias init

    ref = jax.block_until_ready(reference_jax(x, pe, w, b, gamma, beta))

    # Exact (f32-matmul) path: must match the PyTorch-equivalent reference tightly.
    out = jax.block_until_ready(
        time_series_positional_encoding(x, pe, w, b, gamma, beta))
    np.testing.assert_allclose(np.asarray(out), np.asarray(ref),
                               rtol=1e-5, atol=1e-5)

    # Fast path: bf16 MXU operands with f32 accumulation (looser tolerance).
    out_bf16 = jax.block_until_ready(
        time_series_positional_encoding(x, pe, w, b, gamma, beta,
                                        matmul_dtype=jnp.bfloat16))
    np.testing.assert_allclose(np.asarray(out_bf16), np.asarray(ref),
                               rtol=5e-2, atol=5e-2)

    print("KERNEL_OK")
</pallas_src>

<mosaic_0001>
module attributes {stable_mosaic.version = 11 : i64} {
  func.func @_tspe_kernel(%arg0: i32, %arg1: memref<8x32xf32, #tpu.memory_space<vmem>>, %arg2: memref<8x32xf32, #tpu.memory_space<vmem>>, %arg3: memref<32x32xf32, #tpu.memory_space<vmem>>, %arg4: memref<1x32xf32, #tpu.memory_space<vmem>>, %arg5: memref<1x32xf32, #tpu.memory_space<vmem>>, %arg6: memref<1x32xf32, #tpu.memory_space<vmem>>, %arg7: memref<8x32xf32, #tpu.memory_space<vmem>>) attributes {dimension_semantics = [#tpu.dimension_semantics<parallel>], iteration_bounds = array<i64: 2>, scalar_prefetch = 0 : i64, scratch_operands = 0 : i64, tpu.core_type = #tpu.core_type<tc>, window_params = [{transform_indices = @transform_0, window_bounds = array<i64: 8, 32>}, {transform_indices = @transform_1, window_bounds = array<i64: 8, 32>}, {pipeline_mode = #tpu.pipeline_mode<synchronous>, transform_indices = @transform_2, window_bounds = array<i64: 32, 32>}, {pipeline_mode = #tpu.pipeline_mode<synchronous>, transform_indices = @transform_3, window_bounds = array<i64: 1, 32>}, {pipeline_mode = #tpu.pipeline_mode<synchronous>, transform_indices = @transform_4, window_bounds = array<i64: 1, 32>}, {pipeline_mode = #tpu.pipeline_mode<synchronous>, transform_indices = @transform_5, window_bounds = array<i64: 1, 32>}, {transform_indices = @transform_6, window_bounds = array<i64: 8, 32>}]} {
    %c0 = arith.constant 0 : index
    %c0_0 = arith.constant 0 : index
    %0 = vector.load %arg1[%c0, %c0_0] : memref<8x32xf32, #tpu.memory_space<vmem>>, vector<8x32xf32>
    %c0_1 = arith.constant 0 : index
    %c0_2 = arith.constant 0 : index
    %1 = vector.load %arg2[%c0_1, %c0_2] : memref<8x32xf32, #tpu.memory_space<vmem>>, vector<8x32xf32>
    %2 = arith.addf %0, %1 : vector<8x32xf32>
    %c0_3 = arith.constant 0 : index
    %c0_4 = arith.constant 0 : index
    %3 = vector.load %arg3[%c0_3, %c0_4] : memref<32x32xf32, #tpu.memory_space<vmem>>, vector<32x32xf32>
    %cst = arith.constant dense<0.000000e+00> : vector<8x32xf32>
    %4 = tpu.matmul %2, %3, %cst {dimension_numbers = #tpu.dot_dimension_numbers<[1], [0], [0], [1], [0, 0, 1, 1], [], []>} : vector<8x32xf32>, vector<32x32xf32>, vector<8x32xf32> -> vector<8x32xf32>
    %c0_5 = arith.constant 0 : index
    %c0_6 = arith.constant 0 : index
    %5 = vector.load %arg4[%c0_5, %c0_6] : memref<1x32xf32, #tpu.memory_space<vmem>>, vector<1x32xf32>
    %6 = vector.broadcast %5 : vector<1x32xf32> to vector<8x32xf32>
    %7 = arith.addf %4, %6 : vector<8x32xf32>
    %cst_7 = arith.constant dense<0.000000e+00> : vector<8xf32>
    %8 = vector.multi_reduction <add>, %7, %cst_7 [1] : vector<8x32xf32> to vector<8xf32>
    %9 = vector.shape_cast %8 : vector<8xf32> to vector<8x1xf32>
    %cst_8 = arith.constant 3.200000e+01 : f32
    %10 = vector.broadcast %cst_8 : f32 to vector<8x1xf32>
    %11 = arith.divf %9, %10 : vector<8x1xf32>
    %12 = vector.broadcast %11 : vector<8x1xf32> to vector<8x32xf32>
    %13 = arith.subf %7, %12 : vector<8x32xf32>
    %14 = arith.mulf %13, %13 : vector<8x32xf32>
    %cst_9 = arith.constant dense<0.000000e+00> : vector<8xf32>
    %15 = vector.multi_reduction <add>, %14, %cst_9 [1] : vector<8x32xf32> to vector<8xf32>
    %16 = vector.shape_cast %15 : vector<8xf32> to vector<8x1xf32>
    %cst_10 = arith.constant 3.200000e+01 : f32
    %17 = vector.broadcast %cst_10 : f32 to vector<8x1xf32>
    %18 = arith.divf %16, %17 : vector<8x1xf32>
    %19 = vector.broadcast %11 : vector<8x1xf32> to vector<8x32xf32>
    %20 = arith.subf %7, %19 : vector<8x32xf32>
    %cst_11 = arith.constant 9.99999974E-6 : f32
    %21 = vector.broadcast %cst_11 : f32 to vector<8x1xf32>
    %22 = arith.addf %18, %21 : vector<8x1xf32>
    %23 = math.rsqrt %22 : vector<8x1xf32>
    %24 = vector.broadcast %23 : vector<8x1xf32> to vector<8x32xf32>
    %25 = arith.mulf %20, %24 : vector<8x32xf32>
    %c0_12 = arith.constant 0 : index
    %c0_13 = arith.constant 0 : index
    %26 = vector.load %arg5[%c0_12, %c0_13] : memref<1x32xf32, #tpu.memory_space<vmem>>, vector<1x32xf32>
    %27 = vector.broadcast %26 : vector<1x32xf32> to vector<8x32xf32>
    %28 = arith.mulf %25, %27 : vector<8x32xf32>
    %c0_14 = arith.constant 0 : index
    %c0_15 = arith.constant 0 : index
    %29 = vector.load %arg6[%c0_14, %c0_15] : memref<1x32xf32, #tpu.memory_space<vmem>>, vector<1x32xf32>
    %30 = vector.broadcast %29 : vector<1x32xf32> to vector<8x32xf32>
    %31 = arith.addf %28, %30 : vector<8x32xf32>
    %cst_16 = arith.constant 5.000000e-01 : f32
    %32 = vector.broadcast %cst_16 : f32 to vector<8x32xf32>
    %33 = arith.mulf %32, %31 : vector<8x32xf32>
    %cst_17 = arith.constant 0.707106769 : f32
    %34 = vector.broadcast %cst_17 : f32 to vector<8x32xf32>
    %35 = arith.mulf %31, %34 : vector<8x32xf32>
    %36 = math.erf %35 : vector<8x32xf32>
    %cst_18 = arith.constant 1.000000e+00 : f32
    %37 = vector.broadcast %cst_18 : f32 to vector<8x32xf32>
    %38 = arith.addf %37, %36 : vector<8x32xf32>
    %39 = arith.mulf %33, %38 : vector<8x32xf32>
    %c0_19 = arith.constant 0 : index
    %c0_20 = arith.constant 0 : index
    %40 = vector.load %arg7[%c0_19, %c0_20] : memref<8x32xf32, #tpu.memory_space<vmem>>, vector<8x32xf32>
    tpu.vector_store %arg7[%c0_19, %c0_20], %39 {strides = array<i32>} : memref<8x32xf32, #tpu.memory_space<vmem>>, vector<8x32xf32>,
    return
  }
  func.func @transform_0(%arg0: i32) -> (i32, i32) {
    %c0_i32 = arith.constant 0 : i32
    %c0_i32_0 = arith.constant 0 : i32
    return %arg0, %c0_i32 : i32, i32
  }
  func.func @transform_1(%arg0: i32) -> (i32, i32) {
    %c1_i32 = arith.constant 1 : i32
    %c0_i32 = arith.constant 0 : i32
    %0 = arith.cmpi eq, %c1_i32, %c0_i32 : i32
    %c1_i32_0 = arith.constant 1 : i32
    %1 = arith.select %0, %c1_i32_0, %c1_i32 : i32
    %2 = arith.remsi %arg0, %1 : i32
    %c0_i32_1 = arith.constant 0 : i32
    %3 = arith.cmpi ne, %2, %c0_i32_1 : i32
    %c0_i32_2 = arith.constant 0 : i32
    %4 = arith.cmpi slt, %2, %c0_i32_2 : i32
    %c0_i32_3 = arith.constant 0 : i32
    %5 = arith.cmpi slt, %1, %c0_i32_3 : i32
    %6 = arith.xori %4, %5 : i1
    %7 = arith.andi %6, %3 : i1
    %8 = arith.addi %2, %1 : i32
    %9 = arith.select %7, %8, %2 : i32
    %c0_i32_4 = arith.constant 0 : i32
    %c0_i32_5 = arith.constant 0 : i32
    return %9, %c0_i32_4 : i32, i32
  }
  func.func @transform_2(%arg0: i32) -> (i32, i32) {
    %c0_i32 = arith.constant 0 : i32
    %c0_i32_0 = arith.constant 0 : i32
    %c0_i32_1 = arith.constant 0 : i32
    return %c0_i32, %c0_i32_0 : i32, i32
  }
  func.func @transform_3(%arg0: i32) -> (i32, i32) {
    %c0_i32 = arith.constant 0 : i32
    %c0_i32_0 = arith.constant 0 : i32
    %c0_i32_1 = arith.constant 0 : i32
    return %c0_i32, %c0_i32_0 : i32, i32
  }
  func.func @transform_4(%arg0: i32) -> (i32, i32) {
    %c0_i32 = arith.constant 0 : i32
    %c0_i32_0 = arith.constant 0 : i32
    %c0_i32_1 = arith.constant 0 : i32
    return %c0_i32, %c0_i32_0 : i32, i32
  }
  func.func @transform_5(%arg0: i32) -> (i32, i32) {
    %c0_i32 = arith.constant 0 : i32
    %c0_i32_0 = arith.constant 0 : i32
    %c0_i32_1 = arith.constant 0 : i32
    return %c0_i32, %c0_i32_0 : i32, i32
  }
  func.func @transform_6(%arg0: i32) -> (i32, i32) {
    %c0_i32 = arith.constant 0 : i32
    %c0_i32_0 = arith.constant 0 : i32
    return %arg0, %c0_i32 : i32, i32
  }
}

</mosaic_0001>

<bundles_post_ra>
// kernel: tpu_custom_call.1
= control target key start
LH: loop header
LB: loop body
LE: loop exit
PB: predicated region body
PF: predicated region fallthrough
CT: control target
= control target key end

     0   :  { %s1007_s0 = inlined_call_operand.hbm [shape: f32[16,32], index: 0, kind: input, shape index: {}]   ;;  %s1008_s1 = inlined_call_operand.hbm [shape: f32[8,32], index: 1, kind: input, shape index: {}]   ;;  %s1009_s2 = inlined_call_operand.hbm [shape: f32[32,32], index: 2, kind: input, shape index: {}]   ;;  %s1010_s3 = inlined_call_operand.vmem [shape: f32[1,32], index: 3, kind: input, shape index: {}]   ;;  %s1011_s4 = inlined_call_operand.vmem [shape: f32[1,32], index: 4, kind: input, shape index: {}]   ;;  %s1012_s5 = inlined_call_operand.vmem [shape: f32[1,32], index: 5, kind: input, shape index: {}]   ;;  %s1013_s6 = inlined_call_operand.hbm [shape: f32[16,32], index: 6, kind: output, shape index: {}]  }
   0x1   :  { %1018 = sst [smem:[#allocation12_spill]] %s1008_s1 }
   0x2   :  { %11 = vsyncpa [#allocation3], 0 }
   0x3   :  { %13 = vsyncpa [#allocation3 + $0x1], 0 }
   0x4   :  { %14 = vsyncpa [#allocation6], 0 }
   0x5   :  { %15 = vsyncpa [#allocation4], 0 }
   0x6   :  { %17 = vsyncpa [#allocation4 + $0x1], 0  ;;  %s825_s21 = smov 0   ;;  %s827_s22 = smov 0  }
   0x7   :  { %s829_s23 = smov 0   ;;  %s831_s24 = smov 0  }
   0x8 LB: > { %s846_s25 = sadd.s32 4294967295, %s780_s24   ;;  %s521_s26 = sadd.s32 4294967294, %s780_s24   ;;  %s780_s24 = sphi %s831_s24, %s1037_s24   ;;  %s776_s23 = sphi %s829_s23, %s1036_s23   ;;  %s772_s22 = sphi %s827_s22, %s1035_s22   ;;  %s768_s21 = sphi %s825_s21, %s1034_s21  }
   0x9   : > { %p43_p0 = scmp.ne.s32.totalorder %s772_s22, %s768_s21  ;;  %p1014_p1 = scmp.eq.s32.totalorder %s846_s25, 0 }
   0xa   : > { %p178_p3 = scmp.eq.s32.totalorder %s521_s26, 1  ;;  %p522_p5 = scmp.ge.s32.totalorder %s780_s24, 1 }
   0xb   : > { %p855_p4 = por %p1014_p1, %p43_p0  ;;  %p185_p7 = scmp.lt.s32.totalorder %s780_s24, 3 }
   0xc   : > { %p860_p6 = por %p178_p3, %p43_p0  ;;  %s782_s30 = smov [#allocation5]  }
   0xd   : > { %s1019_s27 = scalar_select %p855_p4, 1, 0 }
   0xe   : > { %s1020_s28 = scalar_select %p860_p6, 1, 0 }
   0xf   : > { %p865_p8 = pnand %p522_p5, %p185_p7  ;;  %s198_s7 = sshll.u32 %s782_s30, 4  ;;  %s199_s7 = int_to_ptr.vmem [resolvable:$true] %s198_s7 }
  0x10   : > { %s783_s8 = smov [#allocation7]   ;;  %s643_s11 = scalar_lea.vmem %s199_s7, 128 }
  0x11   : > { %s1021_s29 = scalar_select %p865_p8, 1, 0 }
  0x12   : > { %p569_p10 = pneg %p865_p8  ;;  %s208_s9 = sshll.u32 %s783_s8, 4  ;;  %s209_s9 = int_to_ptr.vmem [resolvable:$true] %s208_s9 }
  0x13   : > { %p644_p13 = scmp.ne.s32.totalorder %s199_s7, %s643_s11  ;;  %p651_p5 = scmp.lt.s32.totalorder %s199_s7, %s199_s7 }
  0x14   : > { %p874_p11 = pnand %p569_p10, %p1014_p1  ;;  %p652_p7 = scmp.lt.s32.totalorder %s643_s11, %s643_s11 }
  0x16   : > { %p634_p12 = pneg %p874_p11  ;;  %p653_p9 = por %p652_p7, %p651_p5 }
  0x18   : > { %p646_p0 = pnand %p644_p13, %p634_p12 }
  0x1a   : > { %p647_p3 = pneg %p646_p0 }
  0x1c   : > { %p654_p2 = pnand %p653_p9, %p647_p3 }
  0x1e   : > { %657 = shalt.err (!%p654_p2)
}
  0x1f   : > { %s1023_s1 = sld [smem:[#allocation12_spill]]  ;;  %s669_s14 = scalar_lea.vmem %s209_s9, 512 }
  0x20   : > { %p670_p10 = scmp.ne.s32.totalorder %s209_s9, %s669_s14  ;;  %p677_p13 = scmp.lt.s32.totalorder %s209_s9, %s209_s9 }
  0x21   : > { %p678_p0 = scmp.lt.s32.totalorder %s669_s14, %s669_s14 }
  0x22   : > { %p672_p1 = pnand %p670_p10, %p634_p12 }
  0x23   : > { %p679_p4 = por %p678_p0, %p677_p13 }
  0x24   : > { %p673_p6 = pneg %p672_p1 }
  0x25   : > { %572 = dma.hbm_to_vmem [thread:$0]  (!%p874_p11), %s1023_s1, 128, %s199_s7, [#allocation6]  }
  0x26   : > { %p680_p8 = pnand %p679_p4, %p673_p6 }
  0x28   : > { %683 = shalt.err (!%p680_p8)
}
  0x29   : > { %s784_s15 = smov 128   ;;  %s785_s16 = smov 8  }
  0x2a   : > { %575 = dma.hbm_to_vmem [thread:$0]  (!%p874_p11), %s1009_s2, 512, %s209_s9, [#allocation6], %s784_s15, %s784_s15, %s785_s16  }
  0x2b   : > { %s897_s19 = sadd.s32 1, %s780_s24   ;;  %s30_s20 = sadd.s32 1, %s776_s23 }
  0x2c   : > { %s27_s26 = ssub.s32 %s780_s24, %s897_s19  ;;  %p37_p1 = scmp.ne.s32.totalorder %s776_s23, %s772_s22 }
  0x2d   : > { %p28_p2 = scmp.eq.s32.totalorder %s27_s26, 0  ;;  %p38_p4 = scmp.eq.s32.totalorder %s780_s24, 0 }
  0x2e   : > { %p1024_p6 = scmp.eq.s32.totalorder %s846_s25, 1  ;;  %p586_p9 = scmp.lt.s32.totalorder %s780_s24, 2 }
  0x2f   : > { %s913_s7 = scalar_select %p28_p2, %s776_s23, %s30_s20  }
  0x30   : > { %p907_p8 = por %p1024_p6, %p37_p1  ;;  %p39_p12 = por %p38_p4, %p37_p1 }
  0x31   : > { %s231_s8 = sand.u32 1, %s776_s23   ;;  %s527_s9 = sshll.u32 %s780_s24, 7 }
  0x32   : > { %s1025_s30 = scalar_select %p907_p8, 1, 0 }
  0x33   : > { %s526_s10 = sshll.u32 %s231_s8, 3  ;;  %s920_s13 = scalar_lea.hbm %s1007_s0, %s527_s9 }
  0x34   : > { %s235_s14 = scalar_lea.vmem [#allocation2], %s526_s10  ;;  %p922_p11 = pnand %p586_p9, %p39_p12 }
  0x35   : > { %s242_s15 = sshll.u32 %s235_s14, 4  ;;  %s232_s17 = scalar_lea.sflag [#allocation3], %s231_s8  ;;  %s243_s15 = int_to_ptr.vmem [resolvable:$true] %s242_s15 }
  0x36   : > { %s684_s18 = scalar_lea.hbm %s920_s13, 128  ;;  %p686_p5 = pneg %p922_p11 }
  0x37   : > { %p685_p3 = scmp.ne.s32.totalorder %s920_s13, %s684_s18  ;;  %s689_s9 = scalar_lea.hbm %s1007_s0, 256 }
  0x38   : > { %p690_p13 = scmp.lt.s32.totalorder %s920_s13, %s1007_s0  ;;  %p691_p0 = scmp.lt.s32.totalorder %s689_s9, %s684_s18 }
  0x39   : > { %p687_p7 = pnand %p686_p5, %p685_p3 }
  0x3a   : > { %p692_p1 = por %p691_p0, %p690_p13 }
  0x3b   : > { %p688_p10 = pneg %p687_p7 }
  0x3d   : > { %p693_p2 = pnand %p692_p1, %p688_p10 }
  0x3f   : > { %696 = shalt.err (!%p693_p2)
}
  0x40   : > { %s697_s12 = scalar_lea.vmem %s243_s15, 128  ;;  %s786_s8 = smov [#allocation2]  }
  0x41   : > { %p698_p4 = scmp.ne.s32.totalorder %s243_s15, %s697_s12  ;;  %s702_s14 = sshll.u32 %s786_s8, 4  ;;  %s703_s14 = int_to_ptr.vmem [resolvable:$false] %s702_s14 }
  0x42   : > { %s704_s1 = scalar_lea.vmem %s703_s14, 256  ;;  %p705_p12 = scmp.lt.s32.totalorder %s243_s15, %s703_s14 }
  0x43   : > { %p700_p6 = pnand %p698_p4, %p686_p5  ;;  %p706_p3 = scmp.lt.s32.totalorder %s704_s1, %s697_s12 }
  0x45   : > { %p701_p9 = pneg %p700_p6  ;;  %p707_p7 = por %p706_p3, %p705_p12 }
  0x47   : > { %p708_p8 = pnand %p707_p7, %p701_p9 }
  0x49   : > { %711 = shalt.err (!%p708_p8)
}
  0x4a   : > { %579 = dma.hbm_to_vmem [thread:$0]  (!%p922_p11), %s920_s13, 128, %s243_s15, %s232_s17  }
  0x4b   : > { %p1027_p10 = scmp.ne.s32.totalorder %s1021_s29, 0 }
  0x4c   : > { %s943_s18 = sand.u32 (!%p1027_p10), 1, %s772_s22   ;;  %p1028_p5 = scmp.ne.s32.totalorder (!%p1027_p10), %s1019_s27, 0 }
  0x4d   : > { %251 = sbr.rel (%p1027_p10) target bundleno = 631 (0x277), region = 44  ;;  %s529_s20 = sshll.u32 (!%p1027_p10), %s943_s18, 3 }
  0x4e   : > { %s254_s26 = scalar_lea.sflag (!%p1027_p10), [#allocation3], %s943_s18  ;;  %s257_s1 = scalar_lea.vmem (!%p1027_p10), [#allocation2], %s529_s20 }
  0x52   : > { %755 = dma.done.wait (%p1028_p5), %s254_s26, 128  }
  0x53   : > { %757 = vsyncadd (%p1028_p5), %s254_s26, 4294967168  ;;  %p1029_p8 = scmp.eq.s32.totalorder %s846_s25, 0 }
  0x55   : > { %759 = dma.done.wait (%p1029_p8), [#allocation6], 640   ;;  %p1030_p11 = pmov %p1029_p8 }
  0x56   : > { %v787_v0 = vmov 0.0   ;;  %vm788_vm0 = vmmov 0   ;;  %v300_v1 = vld [vmem:[#allocation7 + $0x18] sm:$0xff]  ;;  %v299_v2 = vld [vmem:[#allocation7 + $0x10] sm:$0xff]  ;;  %v298_v5 = vld [vmem:[#allocation7 + $0x8] sm:$0xff]  ;;  %vm308_vm1 = vcmask 261120  }
  0x57   : > { %761 = vsyncadd (%p1030_p11), [#allocation6], 4294966656  ;;  %546 = vmatprep.subr.mxu0 %v787_v0  ;;  %554 = vmatprep.mubr.msk.f32.mxu0 %vm788_vm0, %v787_v0  ;;  %v294_v3 = vld [vmem:[%s257_s1] sm:$0xff]  ;;  %v295_v4 = vld [vmem:[#allocation5] sm:$0xff]  ;;  %s538_s9 = sshll.u32 %s846_s25, 7  ;;  %s293_s11 = scalar_lea.vmem [#allocation8], %s529_s20 }
  0x58   : > { %547 = vmatpush3.msra.mxu0 %v300_v1  ;;  %v297_v6 = vld [vmem:[#allocation7] sm:$0xff]  ;;  %v296_v7 = vadd.f32 %v295_v4, %v294_v3  ;;  %v533_v8 = vld [vmem:[%s1010_s3] ss:$0 sm:$0xff]  ;;  %s432_s10 = sshll.u32 %s293_s11, 4  ;;  %s430_s14 = scalar_lea.hbm %s1013_s6, %s538_s9  ;;  %s433_s10 = int_to_ptr.vmem [resolvable:$true] %s432_s10 }
  0x59   : > { %548 = vmatprep.subr.mxu0 %v787_v0  ;;  %v535_v22 = vld [vmem:[%s1011_s4] ss:$0 sm:$0xff]  ;;  %s419_s26 = scalar_lea.sflag [#allocation4], %s943_s18  ;;  %s712_s1 = scalar_lea.vmem %s433_s10, 128 }
  0x5a   : > { %549 = vmatpush3.msra.mxu0 %v299_v2  ;;  %v536_v24 = vld [vmem:[%s1012_s5] ss:$0 sm:$0xff]  ;;  %p713_p13 = scmp.ne.s32.totalorder %s433_s10, %s712_s1  ;;  %p1031_p0 = scmp.ne.s32.totalorder %s1025_s30, 0 }
  0x5b   : > { %550 = vmatprep.subr.mxu0 %v787_v0  ;;  %s789_s25 = smov [#allocation8]  }
  0x5c   : > { %551 = vmatpush3.msra.mxu0 %v298_v5  ;;  %p714_p1 = pnand %p713_p13, %p1031_p0  ;;  %s716_s27 = sshll.u32 %s789_s25, 4  ;;  %s717_s27 = int_to_ptr.vmem [resolvable:$false] %s716_s27 }
  0x5d   : > { %552 = vmatprep.subr.mxu0 %v787_v0  ;;  %s718_s20 = scalar_lea.vmem %s717_s27, 256  ;;  %p719_p4 = scmp.lt.s32.totalorder %s433_s10, %s717_s27 }
  0x5e   : > { %553 = vmatpush3.msra.mxu0 %v297_v6  ;;  %p715_p2 = pneg %p714_p1  ;;  %p720_p6 = scmp.lt.s32.totalorder %s718_s20, %s712_s1 }
  0x5f   : > { %555 = vmatmul.mubr.msk.f32.vlgmr.msra.gmra.mxu0 %vm308_vm1, %v296_v7 }
  0x60   : > { %p721_p9 = por %p720_p6, %p719_p4 }
  0x62   : > { %p722_p12 = pnand %p721_p9, %p715_p2 }
 0x11f   : > { %v378_v9 = vpop.f32.mrf.mxu0 }
 0x120   : > { %v379_v10 = vadd.f32 %v533_v8, %v378_v9 }
 0x121   : > { %v556_v11 = vpop.f32.mrf.mxu0 }
 0x122   : > { %v382_v12 = vsel %vm308_vm1, %v379_v10, 0.0 }
 0x123   : > { %383 = vadd.xlane.f32.xlu0 %v382_v12 }
 0x1ac   : > { %v384_v13 = vpop.xlane.xlu0 %383 }
 0x1ad   : > { %v386_v14 = vmul.f32 0.03125, %v384_v13 }
 0x1af   : > { %v387_v15 = vsub.f32 %v379_v10, %v386_v14 }
 0x1b1   : > { %v388_v16 = vmul.f32 %v387_v15, %v387_v15 }
 0x1b3   : > { %v389_v17 = vsel %vm308_vm1, %v388_v16, 0.0 }
 0x1b4   : > { %390 = vadd.xlane.f32.xlu0 %v389_v17 }
 0x23d   : > { %v391_v18 = vpop.xlane.xlu0 %390 }
 0x23e   : > { %v392_v19 = vmul.f32 0.03125, %v391_v18 }
 0x240   : > { %v393_v20 = vadd.f32 1e-05, %v392_v19 }
 0x242   : > { %628 = vrsqrt.f32 %v393_v20 }
 0x24f   : > { %v629_v21 = vpop.eup %628 }
 0x250   : > { %v395_v23 = vmul.f32 %v629_v21, %v387_v15 }
 0x252   : > { %v403_v25 = vmul.f32 %v535_v22, %v395_v23 }
 0x254   : > { %v411_v26 = vadd.f32 %v536_v24, %v403_v25 }
 0x256   : > { %v413_v27 = vmul.f32 0.70710677, %v411_v26  ;;  %v412_v29 = vmul.f32 0.5, %v411_v26 }
 0x258   : > { %630 = verf.f32 %v413_v27 }
 0x265   : > { %v631_v28 = vpop.eup %630 }
 0x266   : > { %v415_v30 = vadd.f32 1.0, %v631_v28 }
 0x268   : > { %v416_v31 = vmul.f32 %v415_v30, %v412_v29 }
 0x26a   : > { %417 = vst.msk [vmem:[%s293_s11] sm:$0xff] %vm308_vm1, %v416_v31 }
 0x26b   : > { %725 = shalt.err (!%p722_p12)
}
 0x26c   : > { %s726_s29 = scalar_lea.hbm %s430_s14, 128  ;;  %s730_s15 = scalar_lea.hbm %s1013_s6, 256 }
 0x26d   : > { %p727_p3 = scmp.ne.s32.totalorder %s430_s14, %s726_s29  ;;  %p731_p5 = scmp.lt.s32.totalorder %s430_s14, %s1013_s6 }
 0x26e   : > { %p732_p8 = scmp.lt.s32.totalorder %s730_s15, %s726_s29 }
 0x26f   : > { %p728_p7 = pnand %p727_p3, %p1031_p0 }
 0x270   : > { %p733_p11 = por %p732_p8, %p731_p5 }
 0x271   : > { %p729_p10 = pneg %p728_p7 }
 0x273   : > { %p734_p13 = pnand %p733_p11, %p729_p10 }
 0x275   : > { %737 = shalt.err (!%p734_p13)
}
 0x276   : > { %567 = dma.vmem_to_hbm [thread:$0]  (%p1031_p0), %s433_s10, 128, %s430_s14, %s419_s26  }
 0x277 PF: > { %s444_s9 = sand.u32 1, %s768_s21   ;;  %p1032_p1 = scmp.ne.s32.totalorder %s1020_s28, 0 }
 0x278   : > { %p1033_p2 = scmp.ge.s32.totalorder %s780_s24, 2  ;;  %s445_s11 = scalar_lea.sflag [#allocation4], %s444_s9 }
 0x27a   : > { %p581_p4 = pnand %p1033_p2, %p1032_p1 }
 0x27c   : > { %p582_p6 = pneg %p581_p4 }
 0x27e   : > { %763 = dma.done.wait (%p582_p6), %s445_s11, 128  }
 0x27f   : > { %765 = vsyncadd (%p582_p6), %s445_s11, 4294967168  ;;  %p20_p9 = scmp.ge.s32.totalorder %s897_s19, 4   ;;  %s1034_s21 = smov %s772_s22 }
 0x280   : > { %s1035_s22 = smov %s776_s23  ;;  %s1036_s23 = smov %s913_s7 }
 0x281   : > { %s1037_s24 = smov %s897_s19  ;;  %22 = sbr.rel (!%p20_p9) target bundleno = 8 (0x8), region = 97 }
 0x286   :  { %450 = vsyncpa [#allocation3], 1 }
 0x287   :  { %452 = vsyncpa [#allocation3 + $0x1], 1 }
 0x288   :  { %453 = vsyncpa [#allocation6], 1 }
 0x289   :  { %454 = vsyncpa [#allocation4], 1 }
 0x28a   :  { %456 = vsyncpa [#allocation4 + $0x1], 1 }

</bundles_post_ra>
